<compile_context>
chip_gen: v7x
topology: tpu7x:2x2x1
jax: 0.10.0
libtpu: 0.0.40
codegen_flags: <defaults>
</compile_context>

<pallas_src>
import functools

import jax
import jax.numpy as jnp
from jax.experimental import pallas as pl
from jax.experimental.pallas import tpu as pltpu

_LANES = 128
_SUBLANES = 8
_MAX_TILE_ROWS = 2048            # dense path: 2048*128*4 B = 1 MiB per buffer
_MAX_TILE_LANES = 512 * _LANES   # row-vector path: 256 KiB logical per buffer
_MIN_BLOCKS = 2                  # give both v7x TensorCores work when possible


def _round_up(x, m):
    return ((x + m - 1) // m) * m


def _scale_bias_kernel(x_ref, w_ref, b_ref, o_ref):
    # x_ref / o_ref: VMEM tiles of the activation.  w_ref / b_ref: (1,) f32 in
    # SMEM.  Pure VPU scale+bias (1 FMA/element) == exact nn.Linear(1,1) math.
    w = w_ref[0]
    b = b_ref[0]
    y = x_ref[...].astype(jnp.float32) * w + b
    o_ref[...] = y.astype(o_ref.dtype)


def _choose_layout(n):
    """Zero-copy 2-D presentation of the flat length-n activation.

    Returns (shape2d, block_shape, grid, index_map).  Both presentations are
    free bitcast-reshapes of the contiguous (n, 1) input; the last grid block
    may be partial (Pallas clips its DMAs), so no padding is ever materialized
    and no output slice is needed.
    """
    if n % _LANES == 0 and n >= _SUBLANES * _LANES:
        # Lane + sublane dense (rows, 128): full vregs, unmasked stores.
        rows = n // _LANES
        tile_rows = min(
            _MAX_TILE_ROWS,
            max(_SUBLANES, _round_up(pl.cdiv(rows, _MIN_BLOCKS), _SUBLANES)),
        )
        return ((rows, _LANES), (tile_rows, _LANES),
                (pl.cdiv(rows, tile_rows),), lambda i: (i, 0))
    if n <= 2 * _SUBLANES * _LANES:
        # Tiny batch: a single full-array block, one grid step.
        return ((1, n), (1, n), (1,), lambda i: (0, 0))
    # Arbitrary n: row vector (1, n) tiled along lanes, partial last block.
    tile_lanes = min(
        _MAX_TILE_LANES,
        _round_up(pl.cdiv(n, _MIN_BLOCKS), _SUBLANES * _LANES),
    )
    return ((1, n), (1, tile_lanes),
            (pl.cdiv(n, tile_lanes),), lambda i: (0, i))


@functools.partial(jax.jit, static_argnames=("allow_xla_fast_path",))
def linear_regression_forward(x, weight, bias, *, allow_xla_fast_path=False):
    """nn.Linear(1,1) forward: x:(N,1), weight:(1,1), bias:(1,) -> (N,1)."""
    n, in_f = x.shape
    out_f, in_f_w = weight.shape
    assert in_f == 1 and out_f == 1 and in_f_w == 1, "kernel specialized to 1x1 Linear"

    # Parameters as f32 scalars on the SMEM/sreg path regardless of x.dtype
    # (bf16-safe per review); compute in f32, cast on store.
    w_s = weight.reshape(1).astype(jnp.float32)
    b_s = bias.reshape(1).astype(jnp.float32)

    if allow_xla_fast_path and n < 4096:
        # Tiny batches: a fused XLA elementwise op beats any kernel launch.
        return (x.astype(jnp.float32) * w_s[0] + b_s[0]).astype(x.dtype)

    shape2d, block, grid, index_map = _choose_layout(n)
    x2d = x.reshape(shape2d)   # free bitcast of the contiguous (n, 1) column

    out2d = pl.pallas_call(
        _scale_bias_kernel,
        out_shape=jax.ShapeDtypeStruct(shape2d, x.dtype),
        grid=grid,
        in_specs=[
            # NOTE: pipeline_mode=pl.Buffered(3) on this input spec is an
            # optional sweep (DMA-latency-bound body); default depth 2 kept.
            pl.BlockSpec(block, index_map),
            pl.BlockSpec(memory_space=pltpu.MemorySpace.SMEM),
            pl.BlockSpec(memory_space=pltpu.MemorySpace.SMEM),
        ],
        out_specs=pl.BlockSpec(block, index_map),
        compiler_params=pltpu.CompilerParams(
            # >= 2 independent blocks whenever n is large enough, so v7x's two
            # TensorCores both get work; v5e/v6e treat this as a plain loop.
            # Tiles are capped at ~1 MiB/buffer, so double-buffered in+out fits
            # v5e's 16 MiB default scoped VMEM (no vmem_limit_bytes needed).
            dimension_semantics=("parallel",),
        ),
        cost_estimate=pl.CostEstimate(
            flops=2 * n,
            transcendentals=0,
            bytes_accessed=8 * n + 8,   # read x + write y (+ scalar params)
        ),
    )(x2d, w_s, b_s)

    # Free reshape back to the nn.Linear output layout (no slice, no copy).
    return out2d.reshape(n, out_f)


if __name__ == "__main__":
    input_size = 1
    output_size = 1

    key = jax.random.PRNGKey(0)
    kx, kw, kb, kx2, kx3 = jax.random.split(key, 5)

    # Deterministic nn.Linear-style U(-1/sqrt(in), 1/sqrt(in)) init.
    bound = 1.0 / (input_size ** 0.5)
    weight = jax.random.uniform(
        kw, (output_size, input_size), jnp.float32, minval=-bound, maxval=bound
    )
    bias = jax.random.uniform(
        kb, (output_size,), jnp.float32, minval=-bound, maxval=bound
    )

    def ref(xs):
        return xs @ weight.T + bias[None, :]

    # 1) Small batch (typical usage of the module) — single-block kernel path.
    x_small = jax.random.normal(kx, (8, input_size), jnp.float32)
    out_small = jax.block_until_ready(
        linear_regression_forward(x_small, weight, bias))
    assert out_small.shape == (8, output_size)
    assert jnp.allclose(out_small, ref(x_small), atol=1e-6, rtol=1e-5)

    # 2) N not a multiple of 128 — zero-copy (1, N) path, 2 parallel blocks,
    #    partial last block (no padding, no output slice).
    x_odd = jax.random.normal(kx2, (70001, input_size), jnp.float32)
    out_odd = jax.block_until_ready(
        linear_regression_forward(x_odd, weight, bias))
    assert out_odd.shape == (70001, output_size)
    assert jnp.allclose(out_odd, ref(x_odd), atol=1e-6, rtol=1e-5)

    # 3) N a multiple of 128 — lane+sublane-dense (rows, 128) path, 2 blocks.
    x_dense = jax.random.normal(kx3, (131072, input_size), jnp.float32)
    out_dense = jax.block_until_ready(
        linear_regression_forward(x_dense, weight, bias))
    assert out_dense.shape == (131072, output_size)
    assert jnp.allclose(out_dense, ref(x_dense), atol=1e-6, rtol=1e-5)

    print("KERNEL_OK")
</pallas_src>

<mosaic_0001>
module attributes {stable_mosaic.version = 11 : i64} {
  func.func @_scale_bias_kernel(%arg0: i32, %arg1: memref<1x8xf32, #tpu.memory_space<vmem>>, %arg2: memref<1xf32, #tpu.memory_space<smem>>, %arg3: memref<1xf32, #tpu.memory_space<smem>>, %arg4: memref<1x8xf32, #tpu.memory_space<vmem>>) attributes {dimension_semantics = [#tpu.dimension_semantics<parallel>], iteration_bounds = array<i64: 1>, scalar_prefetch = 0 : i64, scratch_operands = 0 : i64, tpu.core_type = #tpu.core_type<tc>, window_params = [{pipeline_mode = #tpu.pipeline_mode<synchronous>, transform_indices = @transform_0, window_bounds = array<i64: 1, 8>}, {transform_indices = @transform_1, window_bounds = array<i64: 1>}, {transform_indices = @transform_2, window_bounds = array<i64: 1>}, {pipeline_mode = #tpu.pipeline_mode<synchronous>, transform_indices = @transform_3, window_bounds = array<i64: 1, 8>}]} {
    %c0 = arith.constant 0 : index
    %0 = memref.load %arg2[%c0] : memref<1xf32, #tpu.memory_space<smem>>
    %c0_0 = arith.constant 0 : index
    %1 = memref.load %arg3[%c0_0] : memref<1xf32, #tpu.memory_space<smem>>
    %c0_1 = arith.constant 0 : index
    %c0_2 = arith.constant 0 : index
    %2 = vector.load %arg1[%c0_1, %c0_2] : memref<1x8xf32, #tpu.memory_space<vmem>>, vector<1x8xf32>
    %3 = vector.broadcast %0 : f32 to vector<1x8xf32>
    %4 = arith.mulf %2, %3 : vector<1x8xf32>
    %5 = vector.broadcast %1 : f32 to vector<1x8xf32>
    %6 = arith.addf %4, %5 : vector<1x8xf32>
    %c0_3 = arith.constant 0 : index
    %c0_4 = arith.constant 0 : index
    %7 = vector.load %arg4[%c0_3, %c0_4] : memref<1x8xf32, #tpu.memory_space<vmem>>, vector<1x8xf32>
    tpu.vector_store %arg4[%c0_3, %c0_4], %6 {strides = array<i32>} : memref<1x8xf32, #tpu.memory_space<vmem>>, vector<1x8xf32>,
    return
  }
  func.func @transform_0(%arg0: i32) -> (i32, i32) {
    %c0_i32 = arith.constant 0 : i32
    %c0_i32_0 = arith.constant 0 : i32
    %c0_i32_1 = arith.constant 0 : i32
    return %c0_i32, %c0_i32_0 : i32, i32
  }
  func.func @transform_1(%arg0: i32) -> i32 {
    %c0_i32 = arith.constant 0 : i32
    %c0_i32_0 = arith.constant 0 : i32
    return %c0_i32 : i32
  }
  func.func @transform_2(%arg0: i32) -> i32 {
    %c0_i32 = arith.constant 0 : i32
    %c0_i32_0 = arith.constant 0 : i32
    return %c0_i32 : i32
  }
  func.func @transform_3(%arg0: i32) -> (i32, i32) {
    %c0_i32 = arith.constant 0 : i32
    %c0_i32_0 = arith.constant 0 : i32
    %c0_i32_1 = arith.constant 0 : i32
    return %c0_i32, %c0_i32_0 : i32, i32
  }
}

</mosaic_0001>

<bundles_post_ra>
// kernel: linear_regression_forward.1
= control target key start
LH: loop header
LB: loop body
LE: loop exit
PB: predicated region body
PF: predicated region fallthrough
CT: control target
= control target key end

     0   :  { %s107_s0 = inlined_call_operand.vmem [shape: f32[1,8], index: 0, kind: input, shape index: {}]   ;;  %s108_s1 = inlined_call_operand.<no memory space> [shape: f32[1], index: 1, kind: input, shape index: {}]   ;;  %s109_s2 = inlined_call_operand.<no memory space> [shape: f32[1], index: 2, kind: input, shape index: {}]   ;;  %s110_s3 = inlined_call_operand.hbm [shape: f32[1,8], index: 3, kind: output, shape index: {}]  }
   0x1   :  { %v19_v0 = vld [vmem:[%s107_s0] sm:$0x1]  ;;  %v20_v1 = vstv %s108_s1  ;;  %v22_v2 = vstv %s109_s2 }
   0x2   :  { %10 = vsyncpa [#allocation5], 0  ;;  %v21_v3 = vmul.f32 %v20_v1, %v19_v0  ;;  %s65_s18 = smov [#allocation4]   ;;  %vm24_vm0 = vcmask 57344  }
   0x3   :  { %s32_s19 = sshll.u32 %s65_s18, 4  ;;  %s33_s19 = int_to_ptr.vmem [resolvable:$true] %s32_s19 }
   0x4   :  { %v23_v4 = vadd.f32 %v22_v2, %v21_v3  ;;  %s41_s20 = scalar_lea.vmem %s33_s19, 16  ;;  %s45_s21 = scalar_lea.vmem %s33_s19, 32 }
   0x5   :  { %p42_p0 = scmp.ne.s32.totalorder %s33_s19, %s41_s20  ;;  %p46_p1 = scmp.lt.s32.totalorder %s33_s19, %s33_s19 }
   0x6   :  { %25 = vst.msk [vmem:[#allocation4] sm:$0x1] %vm24_vm0, %v23_v4  ;;  %p47_p2 = scmp.lt.s32.totalorder %s45_s21, %s41_s20 }
   0x8   :  { %p48_p3 = por %p47_p2, %p46_p1 }
   0xa   :  { %p49_p4 = pnand %p48_p3, %p42_p0 }
   0xc   :  { %52 = shalt.err (!%p49_p4)
}
   0xd   :  { %s53_s2 = scalar_lea.hbm %s110_s3, 16 }
   0xe   :  { %p54_p5 = scmp.ne.s32.totalorder %s110_s3, %s53_s2  ;;  %p57_p6 = scmp.lt.u32.totalorder %s53_s2, %s110_s3 }
  0x10   :  { %p59_p7 = pnand %p57_p6, %p54_p5 }
  0x12   :  { %62 = shalt.err (!%p59_p7)
}
  0x13   :  { %35 = dma.vmem_to_hbm [thread:$0]  %s33_s19, 16, %s110_s3, [#allocation5]  }
  0x14   :  { %63 = dma.done.wait [#allocation5], 16  }
  0x15   :  { %64 = vsyncadd [#allocation5], 4294967280 }
  0x16   :  { %39 = vsyncpa [#allocation5], 1 }

</bundles_post_ra>
